<compile_context>
chip_gen: v5e
topology: v5e:2x2
jax: 0.10.0
libtpu: 0.0.40
codegen_flags: <defaults>
</compile_context>

<pallas_src>
import jax
import jax.numpy as jnp
import numpy as np
from jax import lax
from jax.experimental import pallas as pl
from jax.experimental.pallas import tpu as pltpu  # noqa: F401 (kept for scaling knobs)


# Contract x's In dim (1) with weight's In dim (1): (B, In) x (Out, In) -> (B, Out).
_DOT_DIMS = (((1,), (1,)), ((), ()))


def _sigmoid(z):
    # Exact sigmoid as a single EUP op: sigmoid(z) = 0.5 * tanh(z / 2) + 0.5.
    return 0.5 * jnp.tanh(0.5 * z) + 0.5


# ----------------------------------------------------------------------------
# Kernel 1 (inference path): y_pre = sigmoid(x @ W^T + b)
# ----------------------------------------------------------------------------
def linear_sigmoid_kernel(x_ref, w_ref, b_ref, o_ref):
    z = lax.dot_general(
        x_ref[...], w_ref[...],
        dimension_numbers=_DOT_DIMS,
        preferred_element_type=jnp.float32,
    )
    z = z + b_ref[...]                   # b_ref is (1, Out) -> broadcast over batch
    o_ref[...] = _sigmoid(z)


# ----------------------------------------------------------------------------
# Kernel 2 (training path, fully fused):
#   loss = mean_b[ logsumexp(p_b) - p_b[y_b] ]   with p = sigmoid(x @ W^T + b)
# (PyTorch CrossEntropyLoss applied to the sigmoid output, matching TorchModel.)
# ----------------------------------------------------------------------------
def fused_loss_kernel(x_ref, w_ref, b_ref, y_ref, loss_ref):
    z = lax.dot_general(
        x_ref[...], w_ref[...],
        dimension_numbers=_DOT_DIMS,
        preferred_element_type=jnp.float32,
    )
    p = _sigmoid(z + b_ref[...])                                         # (B, Out)

    # log-softmax / NLL, numerically stable
    m = jnp.max(p, axis=-1, keepdims=True)                               # (B, 1)
    lse = m + jnp.log(jnp.sum(jnp.exp(p - m), axis=-1, keepdims=True))   # (B, 1)

    # pick target logit without a one-hot input: iota compare on the VPU
    # (out-of-range labels silently contribute picked=0, unlike PyTorch's error)
    cls = lax.broadcasted_iota(jnp.int32, p.shape, 1)                    # (B, Out)
    picked = jnp.sum(jnp.where(cls == y_ref[...], p, 0.0),
                     axis=-1, keepdims=True)                             # (B, 1)

    loss_ref[...] = jnp.mean(lse - picked).reshape(1, 1)


# ----------------------------------------------------------------------------
# TorchModel.forward equivalent
# ----------------------------------------------------------------------------
def torch_model_forward(x, weight, bias, y=None):
    """x: (B, In) f32; weight: (Out, In) f32; bias: (Out,) f32; y: optional (B,) int."""
    B, In = x.shape
    Out = weight.shape[0]
    b2 = bias.reshape(1, Out)

    if y is None:
        return pl.pallas_call(
            linear_sigmoid_kernel,
            out_shape=jax.ShapeDtypeStruct((B, Out), jnp.float32),
            in_specs=[
                pl.BlockSpec((B, In), lambda: (0, 0)),
                pl.BlockSpec((Out, In), lambda: (0, 0)),
                pl.BlockSpec((1, Out), lambda: (0, 0)),
            ],
            out_specs=pl.BlockSpec((B, Out), lambda: (0, 0)),
        )(x, weight, b2)

    y2 = y.astype(jnp.int32).reshape(B, 1)
    loss = pl.pallas_call(
        fused_loss_kernel,
        out_shape=jax.ShapeDtypeStruct((1, 1), jnp.float32),
        in_specs=[
            pl.BlockSpec((B, In), lambda: (0, 0)),
            pl.BlockSpec((Out, In), lambda: (0, 0)),
            pl.BlockSpec((1, Out), lambda: (0, 0)),
            pl.BlockSpec((B, 1), lambda: (0, 0)),
        ],
        out_specs=pl.BlockSpec((1, 1), lambda: (0, 0)),
    )(x, weight, b2, y2)
    return loss[0, 0]


if __name__ == "__main__":
    input_size = 5
    output_size = 4
    batch = 8

    key = jax.random.PRNGKey(0)
    kx, kw, kb, ky = jax.random.split(key, 4)

    # nn.Linear-style init: weight (Out, In), bias (Out,)
    bound = 1.0 / (input_size ** 0.5)
    weight = jax.random.uniform(kw, (output_size, input_size), jnp.float32, -bound, bound)
    bias = jax.random.uniform(kb, (output_size,), jnp.float32, -bound, bound)

    x = jax.random.normal(kx, (batch, input_size), jnp.float32)
    y = jax.random.randint(ky, (batch,), 0, output_size, jnp.int32)

    # Inference path (y=None): sigmoid(linear(x))
    y_pre = jax.block_until_ready(torch_model_forward(x, weight, bias))

    # Training path (y given): scalar cross-entropy loss, single fused kernel
    loss = jax.block_until_ready(torch_model_forward(x, weight, bias, y))

    # Reference in numpy f32 (avoids XLA's default bf16 matmul precision on TPU).
    xn = np.asarray(x, dtype=np.float32)
    wn = np.asarray(weight, dtype=np.float32)
    bn = np.asarray(bias, dtype=np.float32)
    yn = np.asarray(y)
    zn = xn @ wn.T + bn
    pn = 1.0 / (1.0 + np.exp(-zn))
    mx = pn.max(axis=-1, keepdims=True)
    lse = (mx + np.log(np.exp(pn - mx).sum(axis=-1, keepdims=True)))[:, 0]
    picked = pn[np.arange(batch), yn]
    ref_loss = np.mean(lse - picked)

    assert np.allclose(np.asarray(y_pre), pn, atol=1e-4), "y_pre mismatch"
    assert np.allclose(float(loss), ref_loss, atol=1e-4), "loss mismatch"

    print("KERNEL_OK")
</pallas_src>

<mosaic_0001>
module attributes {stable_mosaic.version = 11 : i64} {
  func.func @linear_sigmoid_kernel(%arg0: memref<8x5xf32, #tpu.memory_space<vmem>>, %arg1: memref<4x5xf32, #tpu.memory_space<vmem>>, %arg2: memref<1x4xf32, #tpu.memory_space<vmem>>, %arg3: memref<8x4xf32, #tpu.memory_space<vmem>>) attributes {dimension_semantics = [], scalar_prefetch = 0 : i64, scratch_operands = 0 : i64, tpu.core_type = #tpu.core_type<tc>} {
    %c0 = arith.constant 0 : index
    %c0_0 = arith.constant 0 : index
    %0 = vector.load %arg0[%c0, %c0_0] : memref<8x5xf32, #tpu.memory_space<vmem>>, vector<8x5xf32>
    %c0_1 = arith.constant 0 : index
    %c0_2 = arith.constant 0 : index
    %1 = vector.load %arg1[%c0_1, %c0_2] : memref<4x5xf32, #tpu.memory_space<vmem>>, vector<4x5xf32>
    %cst = arith.constant dense<0.000000e+00> : vector<8x4xf32>
    %2 = tpu.matmul %0, %1, %cst {dimension_numbers = #tpu.dot_dimension_numbers<[1], [1], [0], [0], [0, 0, 1, 0], [], []>} : vector<8x5xf32>, vector<4x5xf32>, vector<8x4xf32> -> vector<8x4xf32>
    %c0_3 = arith.constant 0 : index
    %c0_4 = arith.constant 0 : index
    %3 = vector.load %arg2[%c0_3, %c0_4] : memref<1x4xf32, #tpu.memory_space<vmem>>, vector<1x4xf32>
    %4 = vector.broadcast %3 : vector<1x4xf32> to vector<8x4xf32>
    %5 = arith.addf %2, %4 : vector<8x4xf32>
    %cst_5 = arith.constant 5.000000e-01 : f32
    %6 = vector.broadcast %cst_5 : f32 to vector<8x4xf32>
    %7 = arith.mulf %6, %5 : vector<8x4xf32>
    %8 = math.tanh %7 : vector<8x4xf32>
    %cst_6 = arith.constant 5.000000e-01 : f32
    %9 = vector.broadcast %cst_6 : f32 to vector<8x4xf32>
    %10 = arith.mulf %9, %8 : vector<8x4xf32>
    %cst_7 = arith.constant 5.000000e-01 : f32
    %11 = vector.broadcast %cst_7 : f32 to vector<8x4xf32>
    %12 = arith.addf %10, %11 : vector<8x4xf32>
    %c0_8 = arith.constant 0 : index
    %c0_9 = arith.constant 0 : index
    %13 = vector.load %arg3[%c0_8, %c0_9] : memref<8x4xf32, #tpu.memory_space<vmem>>, vector<8x4xf32>
    tpu.vector_store %arg3[%c0_8, %c0_9], %12 {strides = array<i32>} : memref<8x4xf32, #tpu.memory_space<vmem>>, vector<8x4xf32>,
    return
  }
}

</mosaic_0001>

<bundles_post_ra>
// kernel: tpu_custom_call.1
= control target key start
LH: loop header
LB: loop body
LE: loop exit
PB: predicated region body
PF: predicated region fallthrough
CT: control target
= control target key end

     0   :  { %8 = vsyncpa [#allocation3], 0  ;;  %s180_s0 = inlined_call_operand.hbm [shape: f32[8,5], index: 0, kind: input, shape index: {}]   ;;  %s181_s1 = inlined_call_operand.hbm [shape: f32[4,5], index: 1, kind: input, shape index: {}]   ;;  %s182_s2 = inlined_call_operand.vmem [shape: f32[1,4], index: 2, kind: input, shape index: {}]   ;;  %s183_s3 = inlined_call_operand.vmem [shape: f32[8,4], index: 3, kind: output, shape index: {}]  }
   0x1   :  { %s15_s14 = sshll.u32 %s180_s0, 4  ;;  %s16_s14 = int_to_ptr.hbm [resolvable:$true] %s15_s14 }
   0x2   :  { %9 = vsyncpa [#allocation5], 0  ;;  %s146_s15 = smov [#allocation2]   ;;  %s26_s19 = sshll.u32 %s181_s1, 4  ;;  %s27_s19 = int_to_ptr.hbm [resolvable:$true] %s26_s19 }
   0x3   :  { %s17_s16 = sshll.u32 %s146_s15, 4  ;;  %s147_s20 = smov [#allocation4]   ;;  %s18_s16 = int_to_ptr.vmem [resolvable:$true] %s17_s16 }
   0x4   :  { %20 = dma.hbm_to_vmem [thread:$0]  %s16_s14, 128, %s18_s16, [#allocation3]  }
   0x5   :  { %s28_s21 = sshll.u32 %s147_s20, 4  ;;  %s29_s21 = int_to_ptr.vmem [resolvable:$true] %s28_s21 }
   0x6   :  { %31 = dma.hbm_to_vmem [thread:$0]  %s27_s19, 64, %s29_s21, [#allocation5]  }
   0x7   :  { %142 = dma.done.wait [#allocation3], 128  }
   0x8   :  { %143 = vsyncadd [#allocation3], 4294967168 }
   0x9   :  { %144 = dma.done.wait [#allocation5], 64  }
   0xa   :  { %145 = vsyncadd [#allocation5], 4294967232  ;;  %vm48_vm0 = vcmask 39936   ;;  %v43_v0 = vld [vmem:[#allocation4] sm:$0xf]  ;;  %v42_v1 = vld [vmem:[#allocation2] sm:$0xff] }
   0xb   :  { %87 = vmatpush.xpose.msk.msra.mxu0 %vm48_vm0, %v43_v0  ;;  %v91_v2 = vld [vmem:[%s182_s2] ss:$0 sm:$0xff]  ;;  %vm79_vm1 = vcmask 31744  }
   0xe   :  { %88 = vmatmul.msk.f32.vlgmr.msra.gmra.mxu0 %vm48_vm0, %v42_v1 }
  0x8b   :  { %v72_v3 = vpop.f32.mrf.mxu0 }
  0x8c   :  { %v73_v4 = vadd.f32 %v91_v2, %v72_v3 }
  0x8e   :  { %v75_v5 = vmul.f32 0.5, %v73_v4 }
  0x90   :  { %92 = vtanh.f32 %v75_v5 }
  0x96   :  { %v93_v6 = vpop.eup %92 }
  0x97   :  { %v77_v7 = vmul.f32 0.5, %v93_v6 }
  0x99   :  { %v78_v8 = vadd.f32 0.5, %v77_v7 }
  0x9b   :  { %80 = vst.msk [vmem:[%s183_s3] sm:$0xff] %vm79_vm1, %v78_v8 }
  0x9c   :  { %85 = vsyncpa [#allocation3], 1 }
  0x9d   :  { %86 = vsyncpa [#allocation5], 1 }

</bundles_post_ra>
